<compile_context>
chip_gen: v6e
topology: v6e:2x2x1
jax: 0.10.0
libtpu: 0.0.40
codegen_flags: <defaults>
</compile_context>

<pallas_src>
import jax
import jax.numpy as jnp
from jax.experimental import pallas as pl
from jax.experimental.pallas import tpu as pltpu

K_IN = 1080           # true input features
K_PAD = 1152          # 9 * 128, lane-aligned K used for the fc1 matmul
HID = 256             # hidden width (already lane-aligned)
OUT = 2               # true output width (angle, throttle)
OUT_PAD = 8           # narrow padded output width (full-dim block, tiny store)
MAX_TB = 1024         # batch-tile cap (x tile f32: 1024*1080*4 ~= 4.4 MiB)
MIN_SPLIT_ROWS = 128  # only split the batch across >=2 tiles above 2*this


def _round_up(n, m):
    return ((n + m - 1) // m) * m


def _leaky_relu(x, slope=0.2):
    return jnp.where(x > 0, x, slope * x)


def _mlp_kernel(x_ref, w1_ref, b1_ref, w2_ref, b2_ref, w3_ref, b3_ref,
                out_ref, xpad_ref):
    # In-kernel f32 -> bf16 cast + zero-pad of K (1080 -> 1152) into VMEM
    # scratch.  Done unconditionally every step (cheap, hidden under the x DMA)
    # so it stays correct when the grid is split across TensorCores.
    xpad_ref[:, K_IN:] = jnp.zeros((xpad_ref.shape[0], K_PAD - K_IN),
                                   jnp.bfloat16)
    xpad_ref[:, :K_IN] = x_ref[...].astype(jnp.bfloat16)

    # fc_1 + LeakyReLU (bf16 operands, f32 accumulation on the MXU)
    h1 = jnp.dot(xpad_ref[...], w1_ref[...],
                 preferred_element_type=jnp.float32)
    h1 = _leaky_relu(h1 + b1_ref[...]).astype(jnp.bfloat16)
    # fc_2 + LeakyReLU
    h2 = jnp.dot(h1, w2_ref[...], preferred_element_type=jnp.float32)
    h2 = _leaky_relu(h2 + b2_ref[...]).astype(jnp.bfloat16)
    # fc_3 (output lanes padded 2 -> 8; extra columns carry zero weight/bias)
    y = jnp.dot(h2, w3_ref[...], preferred_element_type=jnp.float32)
    out_ref[...] = (y + b3_ref[...]).astype(out_ref.dtype)


def prepare_params(params):
    """Pad / cast f32 (in, out)-layout params into the kernel layout.

    w1: (1080,256) -> (1152,256) bf16 (zero-padded K rows)
    w3: (256,2)    -> (256,8)    bf16 (zero-padded output lanes)
    b3: (1,2)      -> (1,8)      f32
    biases stay f32; w2 cast to bf16.
    """
    w1, b1, w2, b2, w3, b3 = params
    w1p = jnp.zeros((K_PAD, HID), jnp.bfloat16).at[:K_IN, :].set(
        w1.astype(jnp.bfloat16))
    w2p = w2.astype(jnp.bfloat16)
    w3p = jnp.zeros((HID, OUT_PAD), jnp.bfloat16).at[:, :OUT].set(
        w3.astype(jnp.bfloat16))
    b3p = jnp.zeros((1, OUT_PAD), jnp.float32).at[:, :OUT].set(
        b3.astype(jnp.float32))
    return (w1p, b1.astype(jnp.float32), w2p, b2.astype(jnp.float32), w3p, b3p)


def _batch_tiling(B):
    """Balanced batch tiles (multiple of 8 rows), no wrapper-side padding.

    Small batches get a single tile; larger batches get an even number of
    near-equal tiles (<= MAX_TB rows each) so ("parallel",) splits the grid
    evenly across the two v7x TensorCores.  Returns (tile_rows, num_tiles).
    """
    if B <= 2 * MIN_SPLIT_ROWS:
        return _round_up(B, 8), 1
    num_tiles = max(2, pl.cdiv(B, MAX_TB))
    if num_tiles % 2:
        num_tiles += 1
    tb = _round_up(pl.cdiv(B, num_tiles), 8)
    return tb, pl.cdiv(B, tb)


def linear_policy_forward(x, prepared_params):
    """x: (B, 1080) float32. Returns (angle, throttle), each (B,) float32."""
    w1, b1, w2, b2, w3, b3 = prepared_params
    B = x.shape[0]
    TB, num_tiles = _batch_tiling(B)

    resident = lambda shape: pl.BlockSpec(shape, lambda i: (0, 0))

    y = pl.pallas_call(
        _mlp_kernel,
        out_shape=jax.ShapeDtypeStruct((B, OUT_PAD), jnp.float32),
        grid=(num_tiles,),
        in_specs=[
            pl.BlockSpec((TB, K_IN), lambda i: (i, 0)),  # x: streamed raw f32
            resident((K_PAD, HID)),                      # w1: VMEM-resident
            resident((1, HID)),                          # b1
            resident((HID, HID)),                        # w2
            resident((1, HID)),                          # b2
            resident((HID, OUT_PAD)),                    # w3
            resident((1, OUT_PAD)),                      # b3
        ],
        out_specs=pl.BlockSpec((TB, OUT_PAD), lambda i: (i, 0)),
        scratch_shapes=[pltpu.VMEM((TB, K_PAD), jnp.bfloat16)],
        compiler_params=pltpu.CompilerParams(
            dimension_semantics=("parallel",),           # megacore on v7x
            vmem_limit_bytes=32 * 1024 * 1024),
    )(x, w1, b1, w2, b2, w3, b3)

    return y[:, 0], y[:, 1]


def init_params(key):
    """Deterministic synthetic f32 parameters matching nn.Linear shapes.

    PyTorch stores Linear weight as (out, in); we keep the transposed (in, out)
    layout for a direct x @ W matmul.  Biases are kept 2D (1, out).
    """
    k1, k2, k3, k4, k5, k6 = jax.random.split(key, 6)
    scale = 0.02
    w1 = scale * jax.random.normal(k1, (K_IN, HID), jnp.float32)
    b1 = scale * jax.random.normal(k2, (1, HID), jnp.float32)
    w2 = scale * jax.random.normal(k3, (HID, HID), jnp.float32)
    b2 = scale * jax.random.normal(k4, (1, HID), jnp.float32)
    w3 = scale * jax.random.normal(k5, (HID, OUT), jnp.float32)
    b3 = scale * jax.random.normal(k6, (1, OUT), jnp.float32)
    return (w1, b1, w2, b2, w3, b3)


def _reference_forward(x, params):
    """Pure-JAX f32 reference with the original (unpadded, f32) params."""
    w1, b1, w2, b2, w3, b3 = params
    h1 = x @ w1 + b1
    h1 = jnp.where(h1 > 0, h1, 0.2 * h1)
    h2 = h1 @ w2 + b2
    h2 = jnp.where(h2 > 0, h2, 0.2 * h2)
    y = h2 @ w3 + b3
    return y[:, 0], y[:, 1]


def _check(fwd, x, params):
    angle, throttle = fwd(x, params[1])
    jax.block_until_ready((angle, throttle))
    ref_angle, ref_throttle = _reference_forward(x, params[0])
    B = x.shape[0]
    assert angle.shape == (B,) and throttle.shape == (B,)
    # bf16 weight/activation quantization -> loosened tolerance vs f32 ref.
    assert jnp.allclose(angle, ref_angle, atol=2e-2, rtol=2e-2)
    assert jnp.allclose(throttle, ref_throttle, atol=2e-2, rtol=2e-2)


if __name__ == "__main__":
    key = jax.random.PRNGKey(0)
    kx1, kx2, kp = jax.random.split(key, 3)

    params = init_params(kp)
    prepared = prepare_params(params)
    fwd = jax.jit(linear_policy_forward)

    # Small batch, single tile.
    x_small = jax.random.normal(kx1, (8, K_IN), jnp.float32)
    _check(fwd, x_small, (params, prepared))

    # Larger, non-multiple-of-8 batch: exercises the 2-step "parallel" grid
    # and the partial boundary block (masked input DMA + masked store).
    x_big = jax.random.normal(kx2, (300, K_IN), jnp.float32)
    _check(fwd, x_big, (params, prepared))

    print("KERNEL_OK")
</pallas_src>

<mosaic_0001>
module attributes {stable_mosaic.version = 11 : i64} {
  func.func @_mlp_kernel(%arg0: i32, %arg1: memref<8x1080xf32, #tpu.memory_space<vmem>>, %arg2: memref<1152x256xbf16, #tpu.memory_space<vmem>>, %arg3: memref<1x256xf32, #tpu.memory_space<vmem>>, %arg4: memref<256x256xbf16, #tpu.memory_space<vmem>>, %arg5: memref<1x256xf32, #tpu.memory_space<vmem>>, %arg6: memref<256x8xbf16, #tpu.memory_space<vmem>>, %arg7: memref<1x8xf32, #tpu.memory_space<vmem>>, %arg8: memref<8x8xf32, #tpu.memory_space<vmem>>, %arg9: memref<8x1152xbf16, #tpu.memory_space<vmem>>) attributes {dimension_semantics = [#tpu.dimension_semantics<parallel>], iteration_bounds = array<i64: 1>, scalar_prefetch = 0 : i64, scratch_operands = 1 : i64, tpu.core_type = #tpu.core_type<tc>, window_params = [{transform_indices = @transform_0, window_bounds = array<i64: 8, 1080>}, {pipeline_mode = #tpu.pipeline_mode<synchronous>, transform_indices = @transform_1, window_bounds = array<i64: 1152, 256>}, {pipeline_mode = #tpu.pipeline_mode<synchronous>, transform_indices = @transform_2, window_bounds = array<i64: 1, 256>}, {pipeline_mode = #tpu.pipeline_mode<synchronous>, transform_indices = @transform_3, window_bounds = array<i64: 256, 256>}, {pipeline_mode = #tpu.pipeline_mode<synchronous>, transform_indices = @transform_4, window_bounds = array<i64: 1, 256>}, {pipeline_mode = #tpu.pipeline_mode<synchronous>, transform_indices = @transform_5, window_bounds = array<i64: 256, 8>}, {pipeline_mode = #tpu.pipeline_mode<synchronous>, transform_indices = @transform_6, window_bounds = array<i64: 1, 8>}, {transform_indices = @transform_7, window_bounds = array<i64: 8, 8>}]} {
    %cst = arith.constant 0.000000e+00 : bf16
    %0 = vector.broadcast %cst : bf16 to vector<8x72xbf16>
    %c0 = arith.constant 0 : index
    %c1080 = arith.constant 1080 : index
    %1 = vector.load %arg9[%c0, %c1080] : memref<8x1152xbf16, #tpu.memory_space<vmem>>, vector<8x72xbf16>
    tpu.vector_store %arg9[%c0, %c1080], %0 {strides = array<i32>} : memref<8x1152xbf16, #tpu.memory_space<vmem>>, vector<8x72xbf16>,
    %c0_0 = arith.constant 0 : index
    %c0_1 = arith.constant 0 : index
    %2 = vector.load %arg1[%c0_0, %c0_1] : memref<8x1080xf32, #tpu.memory_space<vmem>>, vector<8x1080xf32>
    %3 = arith.truncf %2 : vector<8x1080xf32> to vector<8x1080xbf16>
    %c0_2 = arith.constant 0 : index
    %c0_3 = arith.constant 0 : index
    %4 = vector.load %arg9[%c0_2, %c0_3] : memref<8x1152xbf16, #tpu.memory_space<vmem>>, vector<8x1080xbf16>
    tpu.vector_store %arg9[%c0_2, %c0_3], %3 {strides = array<i32>} : memref<8x1152xbf16, #tpu.memory_space<vmem>>, vector<8x1080xbf16>,
    %c0_4 = arith.constant 0 : index
    %c0_5 = arith.constant 0 : index
    %5 = vector.load %arg9[%c0_4, %c0_5] : memref<8x1152xbf16, #tpu.memory_space<vmem>>, vector<8x1152xbf16>
    %c0_6 = arith.constant 0 : index
    %c0_7 = arith.constant 0 : index
    %6 = vector.load %arg2[%c0_6, %c0_7] : memref<1152x256xbf16, #tpu.memory_space<vmem>>, vector<1152x256xbf16>
    %cst_8 = arith.constant dense<0.000000e+00> : vector<8x256xf32>
    %7 = tpu.matmul %5, %6, %cst_8 {dimension_numbers = #tpu.dot_dimension_numbers<[1], [0], [0], [1], [0, 0, 1, 1], [], []>} : vector<8x1152xbf16>, vector<1152x256xbf16>, vector<8x256xf32> -> vector<8x256xf32>
    %c0_9 = arith.constant 0 : index
    %c0_10 = arith.constant 0 : index
    %8 = vector.load %arg3[%c0_9, %c0_10] : memref<1x256xf32, #tpu.memory_space<vmem>>, vector<1x256xf32>
    %9 = vector.broadcast %8 : vector<1x256xf32> to vector<8x256xf32>
    %10 = arith.addf %7, %9 : vector<8x256xf32>
    %cst_11 = arith.constant 0.000000e+00 : f32
    %11 = vector.broadcast %cst_11 : f32 to vector<8x256xf32>
    %12 = arith.cmpf ogt, %10, %11 : vector<8x256xf32>
    %cst_12 = arith.constant 2.000000e-01 : f32
    %13 = vector.broadcast %cst_12 : f32 to vector<8x256xf32>
    %14 = arith.mulf %13, %10 : vector<8x256xf32>
    %15 = arith.select %12, %10, %14 : vector<8x256xi1>, vector<8x256xf32>
    %16 = arith.truncf %15 : vector<8x256xf32> to vector<8x256xbf16>
    %c0_13 = arith.constant 0 : index
    %c0_14 = arith.constant 0 : index
    %17 = vector.load %arg4[%c0_13, %c0_14] : memref<256x256xbf16, #tpu.memory_space<vmem>>, vector<256x256xbf16>
    %cst_15 = arith.constant dense<0.000000e+00> : vector<8x256xf32>
    %18 = tpu.matmul %16, %17, %cst_15 {dimension_numbers = #tpu.dot_dimension_numbers<[1], [0], [0], [1], [0, 0, 1, 1], [], []>} : vector<8x256xbf16>, vector<256x256xbf16>, vector<8x256xf32> -> vector<8x256xf32>
    %c0_16 = arith.constant 0 : index
    %c0_17 = arith.constant 0 : index
    %19 = vector.load %arg5[%c0_16, %c0_17] : memref<1x256xf32, #tpu.memory_space<vmem>>, vector<1x256xf32>
    %20 = vector.broadcast %19 : vector<1x256xf32> to vector<8x256xf32>
    %21 = arith.addf %18, %20 : vector<8x256xf32>
    %cst_18 = arith.constant 0.000000e+00 : f32
    %22 = vector.broadcast %cst_18 : f32 to vector<8x256xf32>
    %23 = arith.cmpf ogt, %21, %22 : vector<8x256xf32>
    %cst_19 = arith.constant 2.000000e-01 : f32
    %24 = vector.broadcast %cst_19 : f32 to vector<8x256xf32>
    %25 = arith.mulf %24, %21 : vector<8x256xf32>
    %26 = arith.select %23, %21, %25 : vector<8x256xi1>, vector<8x256xf32>
    %27 = arith.truncf %26 : vector<8x256xf32> to vector<8x256xbf16>
    %c0_20 = arith.constant 0 : index
    %c0_21 = arith.constant 0 : index
    %28 = vector.load %arg6[%c0_20, %c0_21] : memref<256x8xbf16, #tpu.memory_space<vmem>>, vector<256x8xbf16>
    %cst_22 = arith.constant dense<0.000000e+00> : vector<8x8xf32>
    %29 = tpu.matmul %27, %28, %cst_22 {dimension_numbers = #tpu.dot_dimension_numbers<[1], [0], [0], [1], [0, 0, 1, 1], [], []>} : vector<8x256xbf16>, vector<256x8xbf16>, vector<8x8xf32> -> vector<8x8xf32>
    %c0_23 = arith.constant 0 : index
    %c0_24 = arith.constant 0 : index
    %30 = vector.load %arg7[%c0_23, %c0_24] : memref<1x8xf32, #tpu.memory_space<vmem>>, vector<1x8xf32>
    %31 = vector.broadcast %30 : vector<1x8xf32> to vector<8x8xf32>
    %32 = arith.addf %29, %31 : vector<8x8xf32>
    %c0_25 = arith.constant 0 : index
    %c0_26 = arith.constant 0 : index
    %33 = vector.load %arg8[%c0_25, %c0_26] : memref<8x8xf32, #tpu.memory_space<vmem>>, vector<8x8xf32>
    tpu.vector_store %arg8[%c0_25, %c0_26], %32 {strides = array<i32>} : memref<8x8xf32, #tpu.memory_space<vmem>>, vector<8x8xf32>,
    return
  }
  func.func @transform_0(%arg0: i32) -> (i32, i32) {
    %c0_i32 = arith.constant 0 : i32
    %c0_i32_0 = arith.constant 0 : i32
    return %arg0, %c0_i32 : i32, i32
  }
  func.func @transform_1(%arg0: i32) -> (i32, i32) {
    %c0_i32 = arith.constant 0 : i32
    %c0_i32_0 = arith.constant 0 : i32
    %c0_i32_1 = arith.constant 0 : i32
    return %c0_i32, %c0_i32_0 : i32, i32
  }
  func.func @transform_2(%arg0: i32) -> (i32, i32) {
    %c0_i32 = arith.constant 0 : i32
    %c0_i32_0 = arith.constant 0 : i32
    %c0_i32_1 = arith.constant 0 : i32
    return %c0_i32, %c0_i32_0 : i32, i32
  }
  func.func @transform_3(%arg0: i32) -> (i32, i32) {
    %c0_i32 = arith.constant 0 : i32
    %c0_i32_0 = arith.constant 0 : i32
    %c0_i32_1 = arith.constant 0 : i32
    return %c0_i32, %c0_i32_0 : i32, i32
  }
  func.func @transform_4(%arg0: i32) -> (i32, i32) {
    %c0_i32 = arith.constant 0 : i32
    %c0_i32_0 = arith.constant 0 : i32
    %c0_i32_1 = arith.constant 0 : i32
    return %c0_i32, %c0_i32_0 : i32, i32
  }
  func.func @transform_5(%arg0: i32) -> (i32, i32) {
    %c0_i32 = arith.constant 0 : i32
    %c0_i32_0 = arith.constant 0 : i32
    %c0_i32_1 = arith.constant 0 : i32
    return %c0_i32, %c0_i32_0 : i32, i32
  }
  func.func @transform_6(%arg0: i32) -> (i32, i32) {
    %c0_i32 = arith.constant 0 : i32
    %c0_i32_0 = arith.constant 0 : i32
    %c0_i32_1 = arith.constant 0 : i32
    return %c0_i32, %c0_i32_0 : i32, i32
  }
  func.func @transform_7(%arg0: i32) -> (i32, i32) {
    %c0_i32 = arith.constant 0 : i32
    %c0_i32_0 = arith.constant 0 : i32
    return %arg0, %c0_i32 : i32, i32
  }
}

</mosaic_0001>

<bundles_post_ra>
// kernel: linear_policy_forward.1
= control target key start
LH: loop header
LB: loop body
LE: loop exit
PB: predicated region body
PF: predicated region fallthrough
CT: control target
= control target key end

     0   :  { %12 = vsyncpa [#allocation4], 0  ;;  %s2395_s0 = inlined_call_operand.vmem [shape: f32[8,1080], index: 0, kind: input, shape index: {}]   ;;  %s2396_s1 = inlined_call_operand.hbm [shape: bf16[1152,256], index: 1, kind: input, shape index: {}]   ;;  %s2397_s2 = inlined_call_operand.vmem [shape: f32[1,256], index: 2, kind: input, shape index: {}]   ;;  %s2398_s3 = inlined_call_operand.hbm [shape: bf16[256,256], index: 3, kind: input, shape index: {}]   ;;  %s2399_s4 = inlined_call_operand.vmem [shape: f32[1,256], index: 4, kind: input, shape index: {}]   ;;  %s2400_s5 = inlined_call_operand.vmem [shape: bf16[256,8], index: 5, kind: input, shape index: {}]   ;;  %s2401_s6 = inlined_call_operand.vmem [shape: f32[1,8], index: 6, kind: input, shape index: {}]   ;;  %s2402_s7 = inlined_call_operand.vmem [shape: f32[8,8], index: 7, kind: output, shape index: {}]  }
   0x1   :  { %13 = vsyncpa [#allocation6], 0  ;;  %s2243_s24 = smov [#allocation3]  }
   0x2   :  { %s21_s25 = sshll.u32 %s2243_s24, 4  ;;  %s22_s25 = int_to_ptr.vmem [resolvable:$true] %s21_s25 }
   0x3   :  { %s2207_s26 = scalar_lea.vmem %s22_s25, 18432  ;;  %p2212_p1 = scmp.lt.s32.totalorder %s22_s25, %s22_s25 }
   0x4   :  { %p2208_p0 = scmp.ne.s32.totalorder %s22_s25, %s2207_s26  ;;  %p2213_p2 = scmp.lt.s32.totalorder %s2207_s26, %s2207_s26 }
   0x6   :  { %p2214_p3 = por %p2213_p2, %p2212_p1 }
   0x8   :  { %p2215_p4 = pnand %p2214_p3, %p2208_p0 }
   0xa   :  { %2218 = shalt.err (!%p2215_p4)
}
   0xb   :  { %s2244_s27 = smov 128   ;;  %s2245_s28 = smov 8  }
   0xc   :  { %27 = dma.hbm_to_vmem [thread:$0]  %s2396_s1, 18432, %s22_s25, [#allocation4], %s2244_s27, %s2244_s27, %s2245_s28  }
   0xd   :  { %s2246_s8 = smov [#allocation5]  }
   0xe   :  { %s35_s9 = sshll.u32 %s2246_s8, 4  ;;  %s36_s9 = int_to_ptr.vmem [resolvable:$true] %s35_s9 }
   0xf   :  { %s2227_s10 = scalar_lea.vmem %s36_s9, 4096  ;;  %p2232_p6 = scmp.lt.s32.totalorder %s36_s9, %s36_s9 }
  0x10   :  { %p2228_p5 = scmp.ne.s32.totalorder %s36_s9, %s2227_s10  ;;  %p2233_p7 = scmp.lt.s32.totalorder %s2227_s10, %s2227_s10 }
  0x12   :  { %p2234_p8 = por %p2233_p7, %p2232_p6 }
  0x14   :  { %p2235_p9 = pnand %p2234_p8, %p2228_p5 }
  0x16   :  { %2238 = shalt.err (!%p2235_p9)
}
  0x17   :  { %41 = dma.hbm_to_vmem [thread:$0]  %s2398_s3, 4096, %s36_s9, [#allocation6], %s2244_s27, %s2244_s27, %s2245_s28  }
  0x18   :  { %2239 = dma.done.wait [#allocation4], 18432  }
  0x19   :  { %2240 = vsyncadd [#allocation4], 4294948864 }
  0x1a   :  { %2241 = dma.done.wait [#allocation6], 4096  }
  0x1b   :  { %2242 = vsyncadd [#allocation6], 4294963200  ;;  %v1910_v0 = vld [vmem:[#allocation3 + $0x74] ss:$8 sps:$4 sm:$0xff]   ;;  %v1912_v1 = vld [vmem:[#allocation3 + $0x70] ss:$8 sps:$4 sm:$0xff]  }
  0x1c   :  { %1022 = vmatprep.subr.bf16.mxu0 %v1910_v0  ;;  %v1913_v2 = vld [vmem:[#allocation3 + $0x174] ss:$8 sps:$4 sm:$0xff]   ;;  %v1915_v3 = vld [vmem:[#allocation3 + $0x170] ss:$8 sps:$4 sm:$0xff]   ;;  %v1916_v4 = vld [vmem:[#allocation3 + $0x64] ss:$8 sps:$4 sm:$0xff]  }
  0x1d   :  { %1023 = vmatpush1.bf16.msra.mxu0 %v1912_v1  ;;  %v1918_v5 = vld [vmem:[#allocation3 + $0x60] ss:$8 sps:$4 sm:$0xff]   ;;  %1063 = vmatprep.subr.bf16.mxu1 %v1913_v2  ;;  %v1919_v6 = vld [vmem:[#allocation3 + $0x164] ss:$8 sps:$4 sm:$0xff]   ;;  %v1922_v8 = vld [vmem:[#allocation3 + $0x54] ss:$8 sps:$4 sm:$0xff]  }
  0x1e   :  { %1064 = vmatpush1.bf16.msra.mxu1 %v1915_v3  ;;  %1024 = vmatprep.subr.bf16.mxu0 %v1916_v4  ;;  %v1921_v7 = vld [vmem:[#allocation3 + $0x160] ss:$8 sps:$4 sm:$0xff]   ;;  %v1924_v9 = vld [vmem:[#allocation3 + $0x50] ss:$8 sps:$4 sm:$0xff]   ;;  %v1925_v10 = vld [vmem:[#allocation3 + $0x154] ss:$8 sps:$4 sm:$0xff]  }
  0x1f   :  { %1065 = vmatprep.subr.bf16.mxu1 %v1919_v6  ;;  %v1928_v11 = vld [vmem:[#allocation3 + $0x44] ss:$8 sps:$4 sm:$0xff]   ;;  %v1927_v12 = vld [vmem:[#allocation3 + $0x150] ss:$8 sps:$4 sm:$0xff]   ;;  %v1930_v14 = vld [vmem:[#allocation3 + $0x40] ss:$8 sps:$4 sm:$0xff]  }
  0x20   :  { %v1931_v13 = vld [vmem:[#allocation3 + $0x144] ss:$8 sps:$4 sm:$0xff]   ;;  %v1934_v15 = vld [vmem:[#allocation3 + $0x34] ss:$8 sps:$4 sm:$0xff]   ;;  %v1933_v16 = vld [vmem:[#allocation3 + $0x140] ss:$8 sps:$4 sm:$0xff]  }
  0x21   :  { %1025 = vmatpush1.bf16.msra.mxu0 %v1918_v5  ;;  %v1937_v17 = vld [vmem:[#allocation3 + $0x134] ss:$8 sps:$4 sm:$0xff]   ;;  %v1936_v18 = vld [vmem:[#allocation3 + $0x30] ss:$8 sps:$4 sm:$0xff]   ;;  %v1940_v19 = vld [vmem:[#allocation3 + $0x24] ss:$8 sps:$4 sm:$0xff]  }
  0x22   :  { %1026 = vmatprep.subr.bf16.mxu0 %v1922_v8  ;;  %1066 = vmatpush1.bf16.msra.mxu1 %v1921_v7  ;;  %v1939_v20 = vld [vmem:[#allocation3 + $0x130] ss:$8 sps:$4 sm:$0xff]   ;;  %v1943_v21 = vld [vmem:[#allocation3 + $0x124] ss:$8 sps:$4 sm:$0xff]   ;;  %v1942_v22 = vld [vmem:[#allocation3 + $0x20] ss:$8 sps:$4 sm:$0xff]  }
  0x23   :  { %1067 = vmatprep.subr.bf16.mxu1 %v1925_v10  ;;  %v1946_v23 = vld [vmem:[#allocation3 + $0x14] ss:$8 sps:$4 sm:$0xff]   ;;  %v1945_v24 = vld [vmem:[#allocation3 + $0x120] ss:$8 sps:$4 sm:$0xff]   ;;  %v1948_v26 = vld [vmem:[#allocation3 + $0x10] ss:$8 sps:$4 sm:$0xff]  }
  0x24   :  { %v1949_v25 = vld [vmem:[#allocation3 + $0x114] ss:$8 sps:$4 sm:$0xff]   ;;  %vm55_vm0 = vcmask 1043904   ;;  %v1952_v27 = vld [vmem:[#allocation3 + $0x4] ss:$8 sps:$4 sm:$0xff]   ;;  %v2247_v29 = vmov 0  }
  0x25   :  { %1027 = vmatpush1.bf16.msra.mxu0 %v1924_v9  ;;  %v1951_v28 = vld [vmem:[#allocation3 + $0x110] ss:$8 sps:$4 sm:$0xff]   ;;  %56 = vst.msk [vmem:[#allocation2 + $0x20] sm:$0xf] %vm55_vm0, %v2247_v29  ;;  %v1955_v30 = vld [vmem:[#allocation3 + $0x104] ss:$8 sps:$4 sm:$0xff]  }
  0x26   :  { %1028 = vmatprep.subr.bf16.mxu0 %v1928_v11  ;;  %1068 = vmatpush1.bf16.msra.mxu1 %v1927_v12  ;;  %v1954_v31 = vld [vmem:[#allocation3] ss:$8 sps:$4 sm:$0xff]   ;;  %v1958_v32 = vld [vmem:[#allocation3 + $0xf4] ss:$8 sps:$4 sm:$0xff]   ;;  %v1960_v35 = vld [vmem:[#allocation3 + $0xf0] ss:$8 sps:$4 sm:$0xff]  }
  0x27   :  { %1069 = vmatprep.subr.bf16.mxu1 %v1931_v13  ;;  %v1957_v33 = vld [vmem:[#allocation3 + $0x100] ss:$8 sps:$4 sm:$0xff]   ;;  %v1961_v34 = vld [vmem:[#allocation3 + $0x1f4] ss:$8 sps:$4 sm:$0xff]   ;;  %v1964_v36 = vld [vmem:[#allocation3 + $0xe4] ss:$8 sps:$4 sm:$0xff]  }
  0x28   :  { %v1963_v37 = vld [vmem:[#allocation3 + $0x1f0] ss:$8 sps:$4 sm:$0xff]   ;;  %v1967_v38 = vld [vmem:[#allocation3 + $0x1e4] ss:$8 sps:$4 sm:$0xff]   ;;  %v1966_v39 = vld [vmem:[#allocation3 + $0xe0] ss:$8 sps:$4 sm:$0xff]  }
  0x29   :  { %1029 = vmatpush1.bf16.msra.mxu0 %v1930_v14  ;;  %v1970_v40 = vld [vmem:[#allocation3 + $0xd4] ss:$8 sps:$4 sm:$0xff]   ;;  %v1969_v41 = vld [vmem:[#allocation3 + $0x1e0] ss:$8 sps:$4 sm:$0xff]   ;;  %v1972_v43 = vld [vmem:[#allocation3 + $0xd0] ss:$8 sps:$4 sm:$0xff]  }
  0x2a   :  { %1030 = vmatprep.subr.bf16.mxu0 %v1934_v15  ;;  %1070 = vmatpush1.bf16.msra.mxu1 %v1933_v16  ;;  %v1973_v42 = vld [vmem:[#allocation3 + $0x1d4] ss:$8 sps:$4 sm:$0xff]   ;;  %v1976_v44 = vld [vmem:[#allocation3 + $0xc4] ss:$8 sps:$4 sm:$0xff]   ;;  %v1975_v45 = vld [vmem:[#allocation3 + $0x1d0] ss:$8 sps:$4 sm:$0xff]  }
  0x2b   :  { %1071 = vmatprep.subr.bf16.mxu1 %v1937_v17  ;;  %v1979_v46 = vld [vmem:[#allocation3 + $0x1c4] ss:$8 sps:$4 sm:$0xff]   ;;  %v57_v47 = vld [vmem:[%s2395_s0] sm:$0xff]  ;;  %v60_v54 = vld [vmem:[%s2395_s0 + $0x18] sm:$0xff]  ;;  %vm107_vm1 = vcmask 453632   ;;  %vm1663_vm6 = vcmask 64512  }
  0x2c   :  { %v58_v48 = vld [vmem:[%s2395_s0 + $0x8] sm:$0xff]  ;;  %v1982_v51 = vld [vmem:[#allocation3 + $0xb4] ss:$8 sps:$4 sm:$0xff]   ;;  %v59_v52 = vld [vmem:[%s2395_s0 + $0x10] sm:$0xff]  ;;  %v2192_v58 = vpack.c.bf16 %v60_v54, %v60_v54  ;;  %v2193_v8 = vpack.c.bf16 %v57_v47, %v57_v47 }
  0x2d   :  { %1031 = vmatpush1.bf16.msra.mxu0 %v1936_v18  ;;  %v1978_v49 = vld [vmem:[#allocation3 + $0xc0] ss:$8 sps:$4 sm:$0xff]   ;;  %v2191_v53 = vpack.c.bf16 %v58_v48, %v58_v48  ;;  %v1985_v55 = vld [vmem:[#allocation3 + $0x1b4] ss:$8 sps:$4 sm:$0xff]   ;;  %v1984_v56 = vld [vmem:[#allocation3 + $0xb0] ss:$8 sps:$4 sm:$0xff]   ;;  %v2194_v11 = vpack.c.bf16 %v59_v52, %v59_v52 }
  0x2e   :  { %1032 = vmatprep.subr.bf16.mxu0 %v1940_v19  ;;  %1072 = vmatpush1.bf16.msra.mxu1 %v1939_v20  ;;  %v1981_v50 = vld [vmem:[#allocation3 + $0x1c0] ss:$8 sps:$4 sm:$0xff]   ;;  %v1988_v57 = vld [vmem:[#allocation3 + $0xa4] ss:$8 sps:$4 sm:$0xff]   ;;  %v1987_v59 = vld [vmem:[#allocation3 + $0x1b0] ss:$8 sps:$4 sm:$0xff]  }
  0x2f   :  { %1073 = vmatprep.subr.bf16.mxu1 %v1943_v21  ;;  %1054 = vmatprep.mubr.bf16.mxu0 %v2191_v53  ;;  %v1991_v60 = vld [vmem:[#allocation3 + $0x1a4] ss:$8 sps:$4 sm:$0xff]   ;;  %v1990_v61 = vld [vmem:[#allocation3 + $0xa0] ss:$8 sps:$4 sm:$0xff]   ;;  %v1994_v62 = vld [vmem:[#allocation3 + $0x94] ss:$8 sps:$4 sm:$0xff]  }
  0x30   :  { %1095 = vmatprep.mubr.bf16.mxu1 %v2192_v58  ;;  %v1993_v63 = vld [vmem:[#allocation3 + $0x1a0] ss:$8 sps:$4 sm:$0xff]   ;;  %v1997_v0 = vld [vmem:[#allocation3 + $0x194] ss:$8 sps:$4 sm:$0xff]   ;;  %v1996_v1 = vld [vmem:[#allocation3 + $0x90] ss:$8 sps:$4 sm:$0xff]  }
  0x31   :  { %1033 = vmatpush1.bf16.msra.mxu0 %v1942_v22  ;;  %v2000_v2 = vld [vmem:[#allocation3 + $0x84] ss:$8 sps:$4 sm:$0xff]   ;;  %v1999_v3 = vld [vmem:[#allocation3 + $0x190] ss:$8 sps:$4 sm:$0xff]   ;;  %v2002_v5 = vld [vmem:[#allocation3 + $0x80] ss:$8 sps:$4 sm:$0xff]  }
  0x32   :  { %1034 = vmatprep.subr.bf16.mxu0 %v1946_v23  ;;  %1074 = vmatpush1.bf16.msra.mxu1 %v1945_v24  ;;  %v2003_v4 = vld [vmem:[#allocation3 + $0x184] ss:$8 sps:$4 sm:$0xff]   ;;  %v2008_v6 = vld [vmem:[#allocation3 + $0x274] ss:$8 sps:$4 sm:$0xff]   ;;  %v2005_v7 = vld [vmem:[#allocation3 + $0x180] ss:$8 sps:$4 sm:$0xff]  }
  0x33   :  { %1075 = vmatprep.subr.bf16.mxu1 %v1949_v25  ;;  %v2011_v9 = vld [vmem:[#allocation3 + $0x374] ss:$8 sps:$4 sm:$0xff]   ;;  %v2006_v10 = vld [vmem:[#allocation3 + $0x270] ss:$8 sps:$4 sm:$0xff]   ;;  %v2014_v12 = vld [vmem:[#allocation3 + $0x264] ss:$8 sps:$4 sm:$0xff]  }
  0x34   :  { %v2009_v13 = vld [vmem:[#allocation3 + $0x370] ss:$8 sps:$4 sm:$0xff]   ;;  %v2017_v14 = vld [vmem:[#allocation3 + $0x364] ss:$8 sps:$4 sm:$0xff]   ;;  %v2012_v15 = vld [vmem:[#allocation3 + $0x260] ss:$8 sps:$4 sm:$0xff]  }
  0x35   :  { %1035 = vmatpush1.bf16.msra.mxu0 %v1948_v26  ;;  %v2020_v16 = vld [vmem:[#allocation3 + $0x254] ss:$8 sps:$4 sm:$0xff]   ;;  %v2015_v17 = vld [vmem:[#allocation3 + $0x360] ss:$8 sps:$4 sm:$0xff]   ;;  %v2018_v19 = vld [vmem:[#allocation3 + $0x250] ss:$8 sps:$4 sm:$0xff]  }
  0x36   :  { %1036 = vmatprep.subr.bf16.mxu0 %v1952_v27  ;;  %1076 = vmatpush1.bf16.msra.mxu1 %v1951_v28  ;;  %v2023_v18 = vld [vmem:[#allocation3 + $0x354] ss:$8 sps:$4 sm:$0xff]   ;;  %v2026_v20 = vld [vmem:[#allocation3 + $0x244] ss:$8 sps:$4 sm:$0xff]   ;;  %v2021_v21 = vld [vmem:[#allocation3 + $0x350] ss:$8 sps:$4 sm:$0xff]  }
  0x37   :  { %1077 = vmatprep.subr.bf16.mxu1 %v1955_v30  ;;  %v2029_v22 = vld [vmem:[#allocation3 + $0x344] ss:$8 sps:$4 sm:$0xff]   ;;  %v2024_v23 = vld [vmem:[#allocation3 + $0x240] ss:$8 sps:$4 sm:$0xff]   ;;  %v2032_v24 = vld [vmem:[#allocation3 + $0x234] ss:$8 sps:$4 sm:$0xff]  }
  0x38   :  { %v2027_v25 = vld [vmem:[#allocation3 + $0x340] ss:$8 sps:$4 sm:$0xff]   ;;  %v2035_v26 = vld [vmem:[#allocation3 + $0x334] ss:$8 sps:$4 sm:$0xff]   ;;  %v2030_v27 = vld [vmem:[#allocation3 + $0x230] ss:$8 sps:$4 sm:$0xff]  }
  0x39   :  { %1037 = vmatpush1.bf16.msra.mxu0 %v1954_v31  ;;  %v2038_v28 = vld [vmem:[#allocation3 + $0x224] ss:$8 sps:$4 sm:$0xff]   ;;  %v2033_v30 = vld [vmem:[#allocation3 + $0x330] ss:$8 sps:$4 sm:$0xff]   ;;  %v2051_v48 = vld [vmem:[#allocation3 + $0x300] ss:$8 sps:$4 sm:$0xff]  }
  0x3a   :  { %1038 = vmatprep.subr.bf16.mxu0 %v1958_v32  ;;  %1078 = vmatpush1.bf16.msra.mxu1 %v1957_v33  ;;  %v2041_v31 = vld [vmem:[#allocation3 + $0x324] ss:$8 sps:$4 sm:$0xff]   ;;  %v2036_v32 = vld [vmem:[#allocation3 + $0x220] ss:$8 sps:$4 sm:$0xff]   ;;  %v2044_v33 = vld [vmem:[#allocation3 + $0x214] ss:$8 sps:$4 sm:$0xff]  }
  0x3b   :  { %1079 = vmatprep.subr.bf16.mxu1 %v1961_v34  ;;  %v2039_v34 = vld [vmem:[#allocation3 + $0x320] ss:$8 sps:$4 sm:$0xff]   ;;  %v2057_v52 = vld [vmem:[#allocation3 + $0x3f0] ss:$8 sps:$4 sm:$0xff]   ;;  %v2065_v54 = vld [vmem:[#allocation3 + $0x3e4] ss:$8 sps:$4 sm:$0xff]  }
  0x3c   :  { %v2060_v53 = vld [vmem:[#allocation3 + $0x2e0] ss:$8 sps:$4 sm:$0xff]  }
  0x3d   :  { %1039 = vmatpush2.bf16.msra.mxu0 %v1960_v35  ;;  %v2042_v35 = vld [vmem:[#allocation3 + $0x210] ss:$8 sps:$4 sm:$0xff]  }
  0x3e   :  { %1040 = vmatprep.subr.bf16.mxu0 %v1964_v36  ;;  %1080 = vmatpush2.bf16.msra.mxu1 %v1963_v37  ;;  %v2047_v36 = vld [vmem:[#allocation3 + $0x314] ss:$8 sps:$4 sm:$0xff]  }
  0x3f   :  { %1081 = vmatprep.subr.bf16.mxu1 %v1967_v38  ;;  %v2310_v37 = vld [vmem:[%s2395_s0 + $0x20] sm:$0xff]  ;;  %v62_v38 = vld [vmem:[%s2395_s0 + $0x28] sm:$0xff] }
  0x41   :  { %1041 = vmatpush2.bf16.msra.mxu0 %v1966_v39  ;;  %v2045_v39 = vld [vmem:[#allocation3 + $0x310] ss:$8 sps:$4 sm:$0xff]  }
  0x42   :  { %1042 = vmatprep.subr.bf16.mxu0 %v1970_v40  ;;  %1082 = vmatpush2.bf16.msra.mxu1 %v1969_v41  ;;  %v2050_v40 = vld [vmem:[#allocation3 + $0x204] ss:$8 sps:$4 sm:$0xff]  }
  0x43   :  { %1083 = vmatprep.subr.bf16.mxu1 %v1973_v42  ;;  %v2318_v41 = vld [vmem:[%s2395_s0 + $0x30] sm:$0xff]  ;;  %v64_v42 = vld [vmem:[%s2395_s0 + $0x38] sm:$0xff] }
  0x44   :  { %v2196_v47 = vpack.c.bf16 %v64_v42, %v64_v42  ;;  %v2120_v42 = vld [vmem:[#allocation3 + $0x410] ss:$8 sps:$4 sm:$0xff]  }
  0x45   :  { %1043 = vmatpush2.bf16.msra.mxu0 %v1972_v43  ;;  %v2053_v43 = vld [vmem:[#allocation3 + $0x304] ss:$8 sps:$4 sm:$0xff]  }
  0x46   :  { %1044 = vmatprep.subr.bf16.mxu0 %v1976_v44  ;;  %1084 = vmatpush2.bf16.msra.mxu1 %v1975_v45  ;;  %v2195_v44 = vpack.c.bf16 %v62_v38, %v62_v38  ;;  %v2048_v45 = vld [vmem:[#allocation3 + $0x200] ss:$8 sps:$4 sm:$0xff]  }
  0x47   :  { %1085 = vmatprep.subr.bf16.mxu1 %v1979_v46  ;;  %v2056_v46 = vld [vmem:[#allocation3 + $0x2f4] ss:$8 sps:$4 sm:$0xff]   ;;  %v2117_v38 = vld [vmem:[#allocation3 + $0x420] ss:$8 sps:$4 sm:$0xff]  }
  0x49   :  { %1045 = vmatpush2.bf16.msra.mxu0 %v1978_v49  ;;  %v2059_v49 = vld [vmem:[#allocation3 + $0x3f4] ss:$8 sps:$4 sm:$0xff]  }
  0x4a   :  { %1046 = vmatprep.subr.bf16.mxu0 %v1982_v51  ;;  %1086 = vmatpush2.bf16.msra.mxu1 %v1981_v50  ;;  %v2054_v50 = vld [vmem:[#allocation3 + $0x2f0] ss:$8 sps:$4 sm:$0xff]   ;;  %v2062_v51 = vld [vmem:[#allocation3 + $0x2e4] ss:$8 sps:$4 sm:$0xff]  }
  0x4b   :  { %1087 = vmatprep.subr.bf16.mxu1 %v1985_v55  ;;  %v65_v55 = vld [vmem:[%s2395_s0 + $0x40] sm:$0xff] }
  0x4c   :  { %v1882_v58 = vpack.c.bf16 %v65_v55, %v65_v55  ;;  %v2156_v55 = vld [vmem:[#allocation5 + $0xe4] ss:$8 sps:$4 sm:$0xff]  }
  0x4d   :  { %1047 = vmatpush2.bf16.msra.mxu0 %v1984_v56  ;;  %v2063_v56 = vld [vmem:[#allocation3 + $0x3e0] ss:$8 sps:$4 sm:$0xff]  }
  0x4e   :  { %1048 = vmatprep.subr.bf16.mxu0 %v1988_v57  ;;  %1088 = vmatpush2.bf16.msra.mxu1 %v1987_v59  ;;  %v2068_v57 = vld [vmem:[#allocation3 + $0x2d4] ss:$8 sps:$4 sm:$0xff]   ;;  %108 = vst.msk [vmem:[#allocation2 + $0x20] sm:$0xf] %vm107_vm1, %v1882_v58  ;;  %v2157_v58 = vld [vmem:[#allocation5 + $0xd0] ss:$8 sps:$4 sm:$0xff]  }
  0x4f   :  { %1089 = vmatprep.subr.bf16.mxu1 %v1991_v60  ;;  %v2071_v59 = vld [vmem:[#allocation3 + $0x3d4] ss:$8 sps:$4 sm:$0xff]   ;;  %v2066_v60 = vld [vmem:[#allocation3 + $0x2d0] ss:$8 sps:$4 sm:$0xff]  }
  0x51   :  { %1049 = vmatpush2.bf16.msra.mxu0 %v1990_v61  ;;  %v2074_v61 = vld [vmem:[#allocation3 + $0x2c4] ss:$8 sps:$4 sm:$0xff]  }
  0x52   :  { %1050 = vmatprep.subr.bf16.mxu0 %v1994_v62  ;;  %1090 = vmatpush2.bf16.msra.mxu1 %v1993_v63  ;;  %v2069_v62 = vld [vmem:[#allocation3 + $0x3d0] ss:$8 sps:$4 sm:$0xff]   ;;  %v2077_v63 = vld [vmem:[#allocation3 + $0x3c4] ss:$8 sps:$4 sm:$0xff]  }
  0x53   :  { %1091 = vmatprep.subr.bf16.mxu1 %v1997_v0  ;;  %v2072_v0 = vld [vmem:[#allocation3 + $0x2c0] ss:$8 sps:$4 sm:$0xff]  }
  0x55   :  { %1051 = vmatpush2.bf16.msra.mxu0 %v1996_v1  ;;  %v2080_v1 = vld [vmem:[#allocation3 + $0x2b4] ss:$8 sps:$4 sm:$0xff]  }
  0x56   :  { %1052 = vmatprep.subr.bf16.mxu0 %v2000_v2  ;;  %1092 = vmatpush2.bf16.msra.mxu1 %v1999_v3  ;;  %v2075_v2 = vld [vmem:[#allocation3 + $0x3c0] ss:$8 sps:$4 sm:$0xff]   ;;  %v2083_v3 = vld [vmem:[#allocation3 + $0x3b4] ss:$8 sps:$4 sm:$0xff]  }
  0x57   :  { %1093 = vmatprep.subr.bf16.mxu1 %v2003_v4  ;;  %v2078_v4 = vld [vmem:[#allocation3 + $0x2b0] ss:$8 sps:$4 sm:$0xff]  }
  0x59   :  { %1053 = vmatpush2.bf16.msra.mxu0 %v2002_v5  ;;  %v2086_v5 = vld [vmem:[#allocation3 + $0x2a4] ss:$8 sps:$4 sm:$0xff]  }
  0x5a   :  { %1104 = vmatprep.subr.bf16.mxu0 %v2008_v6  ;;  %1094 = vmatpush2.bf16.msra.mxu1 %v2005_v7  ;;  %v2081_v6 = vld [vmem:[#allocation3 + $0x3b0] ss:$8 sps:$4 sm:$0xff]   ;;  %v2089_v7 = vld [vmem:[#allocation3 + $0x3a4] ss:$8 sps:$4 sm:$0xff]  }
  0x5b   :  { %1145 = vmatprep.subr.bf16.mxu1 %v2011_v9  ;;  %v2092_v9 = vld [vmem:[#allocation3 + $0x294] ss:$8 sps:$4 sm:$0xff]  }
  0x5c   :  { %1055 = vmatmul.mubr.bf16.vlgmr.msra.gmra.mxu0 %v2193_v8  ;;  %v2084_v8 = vld [vmem:[#allocation3 + $0x2a0] ss:$8 sps:$4 sm:$0xff]  }
  0x5d   :  { %1105 = vmatpush1.bf16.msra.mxu0 %v2006_v10  ;;  %1096 = vmatmul.mubr.bf16.vlgmr.msra.gmra.mxu1 %v2194_v11  ;;  %v2087_v10 = vld [vmem:[#allocation3 + $0x3a0] ss:$8 sps:$4 sm:$0xff]   ;;  %v2095_v11 = vld [vmem:[#allocation3 + $0x394] ss:$8 sps:$4 sm:$0xff]  }
  0x5e   :  { %1106 = vmatprep.subr.bf16.mxu0 %v2014_v12  ;;  %1146 = vmatpush1.bf16.msra.mxu1 %v2009_v13  ;;  %v2090_v12 = vld [vmem:[#allocation3 + $0x290] ss:$8 sps:$4 sm:$0xff]   ;;  %v2098_v13 = vld [vmem:[#allocation3 + $0x284] ss:$8 sps:$4 sm:$0xff]  }
  0x5f   :  { %1147 = vmatprep.subr.bf16.mxu1 %v2017_v14  ;;  %1136 = vmatprep.mubr.bf16.mxu0 %v2195_v44  ;;  %v2093_v14 = vld [vmem:[#allocation3 + $0x390] ss:$8 sps:$4 sm:$0xff]  }
  0x60   :  { %1177 = vmatprep.mubr.bf16.mxu1 %v2196_v47  ;;  %v2139_v44 = vld [vmem:[#allocation5 + $0x30] ss:$8 sps:$4 sm:$0xff]   ;;  %v2142_v47 = vld [vmem:[#allocation5 + $0x20] ss:$8 sps:$4 sm:$0xff]  }
  0x61   :  { %1107 = vmatpush1.bf16.msra.mxu0 %v2012_v15  ;;  %v2101_v15 = vld [vmem:[#allocation3 + $0x384] ss:$8 sps:$4 sm:$0xff]  }
  0x62   :  { %1108 = vmatprep.subr.bf16.mxu0 %v2020_v16  ;;  %1148 = vmatpush1.bf16.msra.mxu1 %v2015_v17  ;;  %v2096_v16 = vld [vmem:[#allocation3 + $0x280] ss:$8 sps:$4 sm:$0xff]   ;;  %v2104_v17 = vld [vmem:[#allocation3 + $0x474] ss:$8 sps:$4 sm:$0xff]  }
  0x63   :  { %1149 = vmatprep.subr.bf16.mxu1 %v2023_v18  ;;  %v2099_v18 = vld [vmem:[#allocation3 + $0x380] ss:$8 sps:$4 sm:$0xff]  }
  0x65   :  { %1109 = vmatpush1.bf16.msra.mxu0 %v2018_v19  ;;  %v2197_v19 = vpack.c.bf16 %v2310_v37, %v2310_v37  ;;  %v2138_v37 = vld [vmem:[#allocation5 + $0x44] ss:$8 sps:$4 sm:$0xff]  }
  0x66   :  { %1110 = vmatprep.subr.bf16.mxu0 %v2026_v20  ;;  %1150 = vmatpush1.bf16.msra.mxu1 %v2021_v21  ;;  %v2102_v20 = vld [vmem:[#allocation3 + $0x470] ss:$8 sps:$4 sm:$0xff]   ;;  %v2198_v21 = vpack.c.bf16 %v2318_v41, %v2318_v41  ;;  %v2141_v41 = vld [vmem:[#allocation5 + $0x34] ss:$8 sps:$4 sm:$0xff]  }
  0x67   :  { %1151 = vmatprep.subr.bf16.mxu1 %v2029_v22  ;;  %v2107_v22 = vld [vmem:[#allocation3 + $0x464] ss:$8 sps:$4 sm:$0xff]  }
  0x69   :  { %1111 = vmatpush1.bf16.msra.mxu0 %v2024_v23  ;;  %v2105_v23 = vld [vmem:[#allocation3 + $0x460] ss:$8 sps:$4 sm:$0xff]  }
  0x6a   :  { %1112 = vmatprep.subr.bf16.mxu0 %v2032_v24  ;;  %1152 = vmatpush1.bf16.msra.mxu1 %v2027_v25  ;;  %v2110_v24 = vld [vmem:[#allocation3 + $0x454] ss:$8 sps:$4 sm:$0xff]   ;;  %v2108_v25 = vld [vmem:[#allocation3 + $0x450] ss:$8 sps:$4 sm:$0xff]  }
  0x6b   :  { %1153 = vmatprep.subr.bf16.mxu1 %v2035_v26  ;;  %v2113_v26 = vld [vmem:[#allocation3 + $0x444] ss:$8 sps:$4 sm:$0xff]  }
  0x6d   :  { %1113 = vmatpush1.bf16.msra.mxu0 %v2030_v27  ;;  %v2127_v27 = vld [vmem:[#allocation5 + $0x70] ss:$8 sps:$4 sm:$0xff]  }
  0x6e   :  { %1114 = vmatprep.subr.bf16.mxu0 %v2038_v28  ;;  %1154 = vmatpush1.bf16.msra.mxu1 %v2033_v30  ;;  %v2129_v28 = vld [vmem:[#allocation5 + $0x74] ss:$8 sps:$4 sm:$0xff]   ;;  %v2111_v30 = vld [vmem:[#allocation3 + $0x440] ss:$8 sps:$4 sm:$0xff]  }
  0x6f   :  { %1155 = vmatprep.subr.bf16.mxu1 %v2041_v31  ;;  %v2132_v31 = vld [vmem:[#allocation5 + $0x64] ss:$8 sps:$4 sm:$0xff]  }
  0x71   :  { %1115 = vmatpush1.bf16.msra.mxu0 %v2036_v32  ;;  %v2116_v32 = vld [vmem:[#allocation3 + $0x434] ss:$8 sps:$4 sm:$0xff]  }
  0x72   :  { %1116 = vmatprep.subr.bf16.mxu0 %v2044_v33  ;;  %1156 = vmatpush1.bf16.msra.mxu1 %v2039_v34  ;;  %v2130_v33 = vld [vmem:[#allocation5 + $0x60] ss:$8 sps:$4 sm:$0xff]   ;;  %v2135_v34 = vld [vmem:[#allocation5 + $0x54] ss:$8 sps:$4 sm:$0xff]  }
  0x73   :  { %1157 = vmatprep.subr.bf16.mxu1 %v2047_v36  ;;  %v2133_v36 = vld [vmem:[#allocation5 + $0x50] ss:$8 sps:$4 sm:$0xff]  }
  0x75   :  { %1117 = vmatpush1.bf16.msra.mxu0 %v2042_v35  ;;  %v2119_v35 = vld [vmem:[#allocation3 + $0x424] ss:$8 sps:$4 sm:$0xff]  }
  0x76   :  { %1118 = vmatprep.subr.bf16.mxu0 %v2050_v40  ;;  %1158 = vmatpush1.bf16.msra.mxu1 %v2045_v39  ;;  %v2122_v39 = vld [vmem:[#allocation3 + $0x414] ss:$8 sps:$4 sm:$0xff]   ;;  %v2136_v40 = vld [vmem:[#allocation5 + $0x40] ss:$8 sps:$4 sm:$0xff]  }
  0x77   :  { %1159 = vmatprep.subr.bf16.mxu1 %v2053_v43  ;;  %v2125_v43 = vld [vmem:[#allocation3 + $0x404] ss:$8 sps:$4 sm:$0xff]  }
  0x79   :  { %1119 = vmatpush1.bf16.msra.mxu0 %v2048_v45  ;;  %v2144_v45 = vld [vmem:[#allocation5 + $0x24] ss:$8 sps:$4 sm:$0xff]  }
  0x7a   :  { %1120 = vmatprep.subr.bf16.mxu0 %v2056_v46  ;;  %1160 = vmatpush1.bf16.msra.mxu1 %v2051_v48  ;;  %v2123_v46 = vld [vmem:[#allocation3 + $0x400] ss:$8 sps:$4 sm:$0xff]   ;;  %v2126_v48 = vld [vmem:[#allocation2 + $0x20] ss:$0 sps:$4 sm:$0xff]  }
  0x7b   :  { %1161 = vmatprep.subr.bf16.mxu1 %v2059_v49  ;;  %v2147_v49 = vld [vmem:[#allocation5 + $0x14] ss:$8 sps:$4 sm:$0xff]  }
  0x7d   :  { %1121 = vmatpush2.bf16.msra.mxu0 %v2054_v50  ;;  %v2145_v50 = vld [vmem:[#allocation5 + $0x10] ss:$8 sps:$4 sm:$0xff]  }
  0x7e   :  { %1122 = vmatprep.subr.bf16.mxu0 %v2062_v51  ;;  %1162 = vmatpush2.bf16.msra.mxu1 %v2057_v52  ;;  %v2150_v51 = vld [vmem:[#allocation5 + $0x4] ss:$8 sps:$4 sm:$0xff]   ;;  %v2148_v52 = vld [vmem:[#allocation5] ss:$8 sps:$4 sm:$0xff]  }
  0x7f   :  { %1163 = vmatprep.subr.bf16.mxu1 %v2065_v54  ;;  %v2151_v54 = vld [vmem:[#allocation5 + $0xf0] ss:$8 sps:$4 sm:$0xff]  }
  0x81   :  { %1123 = vmatpush2.bf16.msra.mxu0 %v2060_v53  ;;  %v2153_v53 = vld [vmem:[#allocation5 + $0xf4] ss:$8 sps:$4 sm:$0xff]  }
  0x82   :  { %1124 = vmatprep.subr.bf16.mxu0 %v2068_v57  ;;  %1164 = vmatpush2.bf16.msra.mxu1 %v2063_v56  ;;  %v2154_v56 = vld [vmem:[#allocation5 + $0xe0] ss:$8 sps:$4 sm:$0xff]   ;;  %v2159_v57 = vld [vmem:[#allocation5 + $0xd4] ss:$8 sps:$4 sm:$0xff]  }
  0x83   :  { %1165 = vmatprep.subr.bf16.mxu1 %v2071_v59  ;;  %v2162_v59 = vld [vmem:[#allocation5 + $0xc4] ss:$8 sps:$4 sm:$0xff]  }
  0x85   :  { %1125 = vmatpush2.bf16.msra.mxu0 %v2066_v60  ;;  %v2160_v60 = vld [vmem:[#allocation5 + $0xc0] ss:$8 sps:$4 sm:$0xff]  }
  0x86   :  { %1126 = vmatprep.subr.bf16.mxu0 %v2074_v61  ;;  %1166 = vmatpush2.bf16.msra.mxu1 %v2069_v62  ;;  %v2165_v61 = vld [vmem:[#allocation5 + $0xb4] ss:$8 sps:$4 sm:$0xff]   ;;  %v2163_v62 = vld [vmem:[#allocation5 + $0xb0] ss:$8 sps:$4 sm:$0xff]  }
  0x87   :  { %1167 = vmatprep.subr.bf16.mxu1 %v2077_v63  ;;  %v2168_v63 = vld [vmem:[#allocation5 + $0xa4] ss:$8 sps:$4 sm:$0xff]  }
  0x89   :  { %1127 = vmatpush2.bf16.msra.mxu0 %v2072_v0  ;;  %v2166_v0 = vld [vmem:[#allocation5 + $0xa0] ss:$8 sps:$4 sm:$0xff]  }
  0x8a   :  { %1128 = vmatprep.subr.bf16.mxu0 %v2080_v1  ;;  %1168 = vmatpush2.bf16.msra.mxu1 %v2075_v2  ;;  %v2171_v1 = vld [vmem:[#allocation5 + $0x94] ss:$8 sps:$4 sm:$0xff]   ;;  %v2169_v2 = vld [vmem:[#allocation5 + $0x90] ss:$8 sps:$4 sm:$0xff]  }
  0x8b   :  { %1169 = vmatprep.subr.bf16.mxu1 %v2083_v3  ;;  %v2174_v3 = vld [vmem:[#allocation5 + $0x84] ss:$8 sps:$4 sm:$0xff]  }
  0x8d   :  { %1129 = vmatpush2.bf16.msra.mxu0 %v2078_v4  ;;  %v2172_v4 = vld [vmem:[#allocation5 + $0x80] ss:$8 sps:$4 sm:$0xff]  }
  0x8e   :  { %1130 = vmatprep.subr.bf16.mxu0 %v2086_v5  ;;  %1170 = vmatpush2.bf16.msra.mxu1 %v2081_v6  ;;  %v2175_v5 = vld [vmem:[%s2400_s5 + $0x78] sm:$0xff]  }
  0x8f   :  { %1171 = vmatprep.subr.bf16.mxu1 %v2089_v7  ;;  %v2176_v6 = vld [vmem:[%s2400_s5 + $0x38] sm:$0xff]   ;;  %v2177_v7 = vld [vmem:[%s2400_s5 + $0x70] sm:$0xff]  }
  0x91   :  { %1131 = vmatpush2.bf16.msra.mxu0 %v2084_v8  ;;  %v2178_v8 = vld [vmem:[%s2400_s5 + $0x30] sm:$0xff]  }
  0x92   :  { %1132 = vmatprep.subr.bf16.mxu0 %v2092_v9  ;;  %1172 = vmatpush2.bf16.msra.mxu1 %v2087_v10  ;;  %v2179_v9 = vld [vmem:[%s2400_s5 + $0x68] sm:$0xff]   ;;  %v260_v10 = vlaneseq }
  0x93   :  { %1173 = vmatprep.subr.bf16.mxu1 %v2095_v11  ;;  %v2180_v11 = vld [vmem:[%s2400_s5 + $0x28] sm:$0xff]  }
  0x95   :  { %1133 = vmatpush2.bf16.msra.mxu0 %v2090_v12  ;;  %v2181_v12 = vld [vmem:[%s2400_s5 + $0x60] sm:$0xff]  }
  0x96   :  { %1134 = vmatprep.subr.bf16.mxu0 %v2098_v13  ;;  %1174 = vmatpush2.bf16.msra.mxu1 %v2093_v14  ;;  %v2352_v13 = vshrl.u32 %v260_v10, 7  ;;  %v2182_v14 = vld [vmem:[%s2400_s5 + $0x20] sm:$0xff]  }
  0x97   :  { %1175 = vmatprep.subr.bf16.mxu1 %v2101_v15  ;;  %v2183_v15 = vld [vmem:[%s2400_s5 + $0x58] sm:$0xff]  }
  0x99   :  { %1135 = vmatpush2.bf16.msra.mxu0 %v2096_v16  ;;  %v262_v16 = vsub.s32 0, %v2352_v13 }
  0x9a   :  { %1186 = vmatprep.subr.bf16.mxu0 %v2104_v17  ;;  %1176 = vmatpush2.bf16.msra.mxu1 %v2099_v18  ;;  %v258_v17 = vld [vmem:[%s2397_s2] sm:$0x3]  ;;  %v2184_v18 = vld [vmem:[%s2400_s5 + $0x18] sm:$0xff]  }
  0x9b   :  { %1439 = vmatprep.subr.bf16.mxu1 %v2129_v28 }
  0x9c   :  { %1137 = vmatmul.mubr.bf16.vlgmr.msra.gmra.mxu0 %v2197_v19  ;;  %v266_v19 = vsub.s32 1, %v2352_v13 }
  0x9d   :  { %1187 = vmatpush1.bf16.msra.mxu0 %v2102_v20  ;;  %1218 = vmatprep.mubr.bf16.mxu0 %v2247_v29  ;;  %v2114_v29 = vld [vmem:[#allocation3 + $0x430] ss:$8 sps:$4 sm:$0xff]  }
  0x9e   :  { %1178 = vmatmul.mubr.bf16.vlgmr.msra.gmra.mxu1 %v2198_v21  ;;  %1188 = vmatprep.subr.bf16.mxu0 %v2107_v22  ;;  %v2185_v20 = vld [vmem:[%s2400_s5 + $0x50] sm:$0xff]   ;;  %v263_v21 = vrot.slane %v258_v17, %v262_v16  ;;  %v267_v22 = vrot.slane %v258_v17, %v266_v19 }
  0x9f   :  { %1440 = vmatpush1.bf16.msra.mxu1 %v2127_v27 }
  0xa0   :  { %1441 = vmatprep.subr.bf16.mxu1 %v2132_v31 }
  0xa1   :  { %1189 = vmatpush1.bf16.msra.mxu0 %v2105_v23 }
  0xa2   :  { %1190 = vmatprep.subr.bf16.mxu0 %v2110_v24 }
  0xa3   :  { %1442 = vmatpush1.bf16.msra.mxu1 %v2130_v33 }
  0xa4   :  { %1443 = vmatprep.subr.bf16.mxu1 %v2135_v34 }
  0xa5   :  { %1191 = vmatpush1.bf16.msra.mxu0 %v2108_v25 }
  0xa6   :  { %1192 = vmatprep.subr.bf16.mxu0 %v2113_v26 }
  0xa7   :  { %1444 = vmatpush1.bf16.msra.mxu1 %v2133_v36 }
  0xa8   :  { %1445 = vmatprep.subr.bf16.mxu1 %v2138_v37 }
  0xa9   :  { %1193 = vmatpush1.bf16.msra.mxu0 %v2111_v30 }
  0xaa   :  { %1194 = vmatprep.subr.bf16.mxu0 %v2116_v32 }
  0xab   :  { %1446 = vmatpush1.bf16.msra.mxu1 %v2136_v40 }
  0xac   :  { %1447 = vmatprep.subr.bf16.mxu1 %v2141_v41 }
  0xad   :  { %1195 = vmatpush1.bf16.msra.mxu0 %v2114_v29 }
  0xae   :  { %1196 = vmatprep.subr.bf16.mxu0 %v2119_v35 }
  0xaf   :  { %1448 = vmatpush1.bf16.msra.mxu1 %v2139_v44 }
  0xb0   :  { %1449 = vmatprep.subr.bf16.mxu1 %v2144_v45 }
  0xb1   :  { %1197 = vmatpush1.bf16.msra.mxu0 %v2117_v38 }
  0xb2   :  { %1198 = vmatprep.subr.bf16.mxu0 %v2122_v39 }
  0xb3   :  { %1450 = vmatpush1.bf16.msra.mxu1 %v2142_v47 }
  0xb4   :  { %1451 = vmatprep.subr.bf16.mxu1 %v2147_v49 }
  0xb5   :  { %1199 = vmatpush1.bf16.msra.mxu0 %v2120_v42 }
  0xb6   :  { %1200 = vmatprep.subr.bf16.mxu0 %v2125_v43 }
  0xb7   :  { %1452 = vmatpush1.bf16.msra.mxu1 %v2145_v50 }
  0xb8   :  { %1453 = vmatprep.subr.bf16.mxu1 %v2150_v51 }
  0xb9   :  { %1201 = vmatpush1.bf16.msra.mxu0 %v2123_v46 }
  0xba   :  { %1883 = vmatprep.subr.bf16.mxu0 %v2175_v5 }
  0xbb   :  { %1454 = vmatpush1.bf16.msra.mxu1 %v2148_v52 }
  0xbc   :  { %1219 = vmatmul.mubr.bf16.vlgmr.msra.gmra.mxu0 %v2126_v48  ;;  %1455 = vmatprep.subr.bf16.mxu1 %v2153_v53 }
  0xbd   :  { %1884 = vmatpush3.bf16.msra.mxu0 %v2176_v6 }
  0xbe   :  { %1885 = vmatprep.subr.bf16.mxu0 %v2177_v7 }
  0xbf   :  { %1456 = vmatpush2.bf16.msra.mxu1 %v2151_v54 }
  0xc0   :  { %1457 = vmatprep.subr.bf16.mxu1 %v2156_v55 }
  0xc1   :  { %1886 = vmatpush3.bf16.msra.mxu0 %v2178_v8 }
  0xc2   :  { %1887 = vmatprep.subr.bf16.mxu0 %v2179_v9 }
  0xc3   :  { %1458 = vmatpush2.bf16.msra.mxu1 %v2154_v56 }
  0xc4   :  { %1459 = vmatprep.subr.bf16.mxu1 %v2159_v57 }
  0xc5   :  { %1888 = vmatpush3.bf16.msra.mxu0 %v2180_v11 }
  0xc6   :  { %1889 = vmatprep.subr.bf16.mxu0 %v2181_v12 }
  0xc7   :  { %1460 = vmatpush2.bf16.msra.mxu1 %v2157_v58 }
  0xc8   :  { %1461 = vmatprep.subr.bf16.mxu1 %v2162_v59  ;;  %v2186_v59 = vld [vmem:[%s2400_s5 + $0x10] sm:$0xff]  }
  0xc9   :  { %1890 = vmatpush3.bf16.msra.mxu0 %v2182_v14 }
  0xca   :  { %1891 = vmatprep.subr.bf16.mxu0 %v2183_v15 }
  0xcb   :  { %1462 = vmatpush2.bf16.msra.mxu1 %v2160_v60  ;;  %v2187_v60 = vld [vmem:[%s2400_s5 + $0x48] sm:$0xff]  }
  0xcc   :  { %1463 = vmatprep.subr.bf16.mxu1 %v2165_v61  ;;  %v2188_v61 = vld [vmem:[%s2400_s5 + $0x8] sm:$0xff]  }
  0xcd   :  { %1892 = vmatpush3.bf16.msra.mxu0 %v2184_v18 }
  0xce   :  { %1893 = vmatprep.subr.bf16.mxu0 %v2185_v20 }
  0xcf   :  { %1464 = vmatpush2.bf16.msra.mxu1 %v2163_v62  ;;  %v2189_v62 = vld [vmem:[%s2400_s5 + $0x40] sm:$0xff]  }
  0xd0   :  { %1465 = vmatprep.subr.bf16.mxu1 %v2168_v63  ;;  %v2190_v63 = vld [vmem:[%s2400_s5] sm:$0xff]  }
  0xd1   :  { %1894 = vmatpush3.bf16.msra.mxu0 %v2186_v59 }
  0xd2   :  { %1895 = vmatprep.subr.bf16.mxu0 %v2187_v60 }
  0xd3   :  { %1466 = vmatpush2.bf16.msra.mxu1 %v2166_v0  ;;  %v1267_v0 = vld [vmem:[%s2399_s4] sm:$0x3] }
  0xd4   :  { %1467 = vmatprep.subr.bf16.mxu1 %v2171_v1  ;;  %v1272_v1 = vrot.slane %v1267_v0, %v262_v16  ;;  %v1861_v16 = vld [vmem:[%s2401_s6] ss:$0 sm:$0xff] }
  0xd5   :  { %1896 = vmatpush3.bf16.msra.mxu0 %v2188_v61 }
  0xd6   :  { %1897 = vmatprep.subr.bf16.mxu0 %v2189_v62 }
  0xd7   :  { %1468 = vmatpush2.bf16.msra.mxu1 %v2169_v2  ;;  %v1276_v2 = vrot.slane %v1267_v0, %v266_v19 }
  0xd8   :  { %1469 = vmatprep.subr.bf16.mxu1 %v2174_v3 }
  0xd9   :  { %1898 = vmatpush3.bf16.msra.mxu0 %v2190_v63 }
  0xdb   :  { %1470 = vmatpush2.bf16.msra.mxu1 %v2172_v4 }
 0x11c   :  { %v1056_v23 = vpop.f32.mrf.mxu0 }
 0x11d   :  { %v1057_v24 = vadd.f32 %v1056_v23, %v263_v21  ;;  %v1097_v26 = vpop.f32.mrf.mxu1 }
 0x11e   :  { %v1058_v25 = vpop.f32.mrf.mxu0 }
 0x11f   :  { %v1059_v27 = vadd.f32 %v1058_v25, %v267_v22  ;;  %v1098_v28 = vadd.f32 %v1097_v26, %v1057_v24  ;;  %v1099_v31 = vpop.f32.mrf.mxu1 }
 0x120   :  { %v1060_v30 = vpop.f32.mrf.mxu0 }
 0x121   :  { %v1100_v32 = vadd.f32 %v1099_v31, %v1059_v27  ;;  %v1101_v34 = vpop.f32.mrf.mxu1 }
 0x122   :  { %v1061_v33 = vpop.f32.mrf.mxu0 }
 0x123   :  { %v1102_v29 = vpop.f32.mrf.mxu1 }
 0x15c   :  { %v1138_v35 = vpop.f32.mrf.mxu0 }
 0x15d   :  { %v1139_v43 = vadd.f32 %v1138_v35, %v1098_v28 }
 0x15e   :  { %v1140_v36 = vpop.f32.mrf.mxu0  ;;  %v1179_v37 = vpop.f32.mrf.mxu1 }
 0x15f   :  { %v1141_v44 = vadd.f32 %v1140_v36, %v1100_v32  ;;  %v1180_v45 = vadd.f32 %v1179_v37, %v1139_v43 }
 0x160   :  { %v1142_v38 = vpop.f32.mrf.mxu0  ;;  %v1181_v39 = vpop.f32.mrf.mxu1 }
 0x161   :  { %v1182_v47 = vadd.f32 %v1181_v39, %v1141_v44 }
 0x162   :  { %v1143_v40 = vpop.f32.mrf.mxu0  ;;  %v1183_v41 = vpop.f32.mrf.mxu1 }
 0x164   :  { %v1184_v42 = vpop.f32.mrf.mxu1 }
 0x17c   :  { %v1220_v46 = vpop.f32.mrf.mxu0 }
 0x17d   :  { %v1221_v48 = vadd.f32 %v1220_v46, %v1180_v45 }
 0x17e   :  { %v1222_v49 = vpop.f32.mrf.mxu0 }
 0x17f   :  { %vm1227_vm2 = vcmp.gt.f32.partialorder %v1221_v48, 0.0  ;;  %v1229_v50 = vmul.f32 0.2, %v1221_v48  ;;  %v1223_v51 = vadd.f32 %v1222_v49, %v1182_v47 }
 0x180   :  { %v1224_v52 = vpop.f32.mrf.mxu0 }
 0x181   :  { %vm1228_vm3 = vcmp.gt.f32.partialorder %v1223_v51, 0.0  ;;  %v1230_v53 = vmul.f32 0.2, %v1223_v51  ;;  %v1231_v54 = vsel %vm1227_vm2, %v1221_v48, %v1229_v50 }
 0x182   :  { %v1225_v55 = vpop.f32.mrf.mxu0  ;;  %v1233_v58 = vpack.c.bf16 %v1231_v54, %v1231_v54 }
 0x183   :  { %v1232_v56 = vsel %vm1228_vm3, %v1223_v51, %v1230_v53 }
 0x184   :  { %v1234_v57 = vpack.c.bf16 %v1232_v56, %v1232_v56 }
 0x186   :  { %1471 = vmatprep.mubr.bf16.mxu1 %v1234_v57 }
 0x187   :  { %1472 = vmatmul.mubr.bf16.vlgmr.msra.gmra.mxu1 %v1233_v58 }
 0x247   :  { %v1473_v3 = vpop.f32.mrf.mxu1 }
 0x248   :  { %v1474_v4 = vadd.f32 %v1473_v3, %v1272_v1 }
 0x249   :  { %v1475_v5 = vpop.f32.mrf.mxu1 }
 0x24a   :  { %vm1480_vm4 = vcmp.gt.f32.partialorder %v1474_v4, 0.0  ;;  %v1482_v6 = vmul.f32 0.2, %v1474_v4  ;;  %v1476_v7 = vadd.f32 %v1475_v5, %v1276_v2 }
 0x24b   :  { %v1477_v8 = vpop.f32.mrf.mxu1 }
 0x24c   :  { %vm1481_vm5 = vcmp.gt.f32.partialorder %v1476_v7, 0.0  ;;  %v1483_v9 = vmul.f32 0.2, %v1476_v7  ;;  %v1484_v10 = vsel %vm1480_vm4, %v1474_v4, %v1482_v6 }
 0x24d   :  { %v1478_v11 = vpop.f32.mrf.mxu1  ;;  %v1486_v14 = vpack.c.bf16 %v1484_v10, %v1484_v10 }
 0x24e   :  { %v1485_v12 = vsel %vm1481_vm5, %v1476_v7, %v1483_v9 }
 0x24f   :  { %v1487_v13 = vpack.c.bf16 %v1485_v12, %v1485_v12 }
 0x251   :  { %1655 = vmatprep.mubr.bf16.mxu0 %v1487_v13 }
 0x252   :  { %1656 = vmatmul.mubr.bf16.vlgmr.msra.gmra.mxu0 %v1486_v14 }
 0x312   :  { %v1899_v15 = vpop.f32.mrf.mxu0 }
 0x314   :  { %v1900_v17 = vpop.f32.mrf.mxu0 }
 0x315   :  { %v1901_v18 = vadd.f32 %v1900_v17, %v1899_v15 }
 0x316   :  { %v1902_v19 = vpop.f32.mrf.mxu0 }
 0x317   :  { %v1658_v20 = vadd.f32 %v1901_v18, %v1861_v16 }
 0x318   :  { %v1903_v21 = vpop.f32.mrf.mxu0 }
 0x319   :  { %1664 = vst.msk [vmem:[%s2402_s7] sm:$0xff] %vm1663_vm6, %v1658_v20 }
 0x31a   :  { %1669 = vsyncpa [#allocation4], 1 }
 0x31b   :  { %1670 = vsyncpa [#allocation6], 1 }

</bundles_post_ra>
